<compile_context>
chip_gen: v6e
topology: v6e:2x2x1
jax: 0.10.0
libtpu: 0.0.40
codegen_flags: <defaults>
</compile_context>

<pallas_src>
import functools

import jax
import jax.numpy as jnp
from jax.experimental import pallas as pl
from jax.experimental.pallas import tpu as pltpu

_LANE = 128


# ----------------------------- Pallas kernel --------------------------------
def _conv_kernel(q_ref, w_ref, b_ref, o_ref):
    # q_ref: (1, TC, TL) bf16  per-tap-stacked input tile (lane axis = out pixels)
    # w_ref: (O, TC)     bf16  folded weights (contraction axis = taps x channels)
    # b_ref: (O, 1)      f32   bias (broadcasts along the lane axis)
    # o_ref: (1, O, TL)  f32   output tile
    acc = jnp.dot(w_ref[...], q_ref[0], preferred_element_type=jnp.float32)
    o_ref[0] = (acc + b_ref[...]).astype(o_ref.dtype)


def _ceil_to(a, b):
    return -(-a // b) * b


def _vmem_limit_bytes():
    # Per-generation scoped-VMEM budget: ~3/4 of physical capacity, capped.
    try:
        cap = pltpu.get_tpu_info().vmem_capacity_bytes
    except Exception:  # pragma: no cover - conservative fallback
        cap = 64 * 1024 * 1024
    return int(min(cap * 3 // 4, 100 * 1024 * 1024))


# ----------------------------- RDFTConv forward ------------------------------
@functools.partial(jax.jit,
                   static_argnames=("kernel_size", "stride", "padding", "corr"))
def rdft_conv_forward(x, kernel_real, kernel_imag, bias,
                      kernel_size=(3, 3), stride=2, padding=1, corr=True):
    """x: (N, C, H, W) NCHW float32. Returns (N, O, H_out, W_out) float32."""
    KH, KW = kernel_size
    S = stride
    O, C = kernel_real.shape[:2]
    N, Cx, H, W = x.shape
    assert Cx == C

    # Parameter glue: spatial kernel from frequency-domain params (tiny).
    kernel = jnp.fft.irfft2(kernel_real + 1j * kernel_imag,
                            s=kernel_size, axes=(-2, -1)).astype(jnp.float32)
    if not corr:
        kernel = jnp.flip(kernel, axis=(-2, -1))

    T = KH * KW
    TC = T * C
    # Folded weights: w_fold[o, t*C + c] = kernel[o, c, kh, kw], t = kh*KW + kw.
    w_fold = jnp.transpose(kernel, (0, 2, 3, 1)).reshape(O, TC).astype(jnp.bfloat16)
    bias2d = bias.reshape(O, 1).astype(jnp.float32)

    # Output geometry.
    Hp, Wp = H + 2 * padding, W + 2 * padding
    Ho = (Hp - KH) // S + 1
    Wo = (Wp - KW) // S + 1
    Lo = Ho * Wo

    # Invariant: every tap's strided window stays inside the true padded image
    # (holds for any KH,KW,S via Ho/Wo definition; documented per review).
    assert (KH - 1) + S * (Ho - 1) <= Hp - 1
    assert (KW - 1) + S * (Wo - 1) <= Wp - 1

    # --- polyphase / per-tap rearrangement (bf16, ~T/S^2 x input bytes) ------
    x_bf = x.astype(jnp.bfloat16)
    x_pad = jnp.pad(x_bf, ((0, 0), (0, 0),
                           (padding, padding), (padding, padding)))
    taps = []
    for kh in range(KH):
        for kw in range(KW):
            sl = x_pad[:, :,
                       kh: kh + S * (Ho - 1) + 1: S,
                       kw: kw + S * (Wo - 1) + 1: S]          # (N, C, Ho, Wo)
            taps.append(sl)
    # (N, T, C, Ho, Wo) -> (N, T*C, Ho*Wo): contraction axis matches w_fold.
    q = jnp.stack(taps, axis=1).reshape(N, TC, Lo)

    # --- lane-axis padding + tile-size selection (per-generation VMEM) -------
    vmem_limit = _vmem_limit_bytes()
    per_lane_bytes = 2 * (TC * 2) + 2 * (O * 4)        # dbl-buffered q + out
    fixed_bytes = O * TC * 2 + O * 4 * _LANE           # resident weights + bias
    budget = max(vmem_limit - fixed_bytes - (4 << 20), _LANE * per_lane_bytes)
    max_tile = max(_LANE, (budget // per_lane_bytes) // _LANE * _LANE)
    tile_l = int(min(_ceil_to(Lo, _LANE), max_tile, 2048))
    Lp = int(_ceil_to(Lo, tile_l))
    n_tiles = Lp // tile_l
    if Lp > Lo:
        q = jnp.pad(q, ((0, 0), (0, 0), (0, Lp - Lo)))

    # --- hot path: one fused (O, TC) x (TC, tile_l) matmul per tile -----------
    flops = 2 * N * O * TC * Lp
    bytes_accessed = (N * TC * Lp * 2 + O * TC * 2 + O * 4 + N * O * Lp * 4)

    out = pl.pallas_call(
        _conv_kernel,
        out_shape=jax.ShapeDtypeStruct((N, O, Lp), jnp.float32),
        grid_spec=pltpu.PrefetchScalarGridSpec(
            num_scalar_prefetch=0,
            grid=(N, n_tiles),
            in_specs=[
                pl.BlockSpec((1, TC, tile_l), lambda n, l: (n, 0, l)),
                pl.BlockSpec((O, TC), lambda n, l: (0, 0)),
                pl.BlockSpec((O, 1), lambda n, l: (0, 0)),
            ],
            out_specs=pl.BlockSpec((1, O, tile_l), lambda n, l: (n, 0, l)),
        ),
        compiler_params=pltpu.CompilerParams(
            dimension_semantics=("parallel", "parallel"),
            vmem_limit_bytes=vmem_limit),
        cost_estimate=pl.CostEstimate(flops=flops, transcendentals=0,
                                      bytes_accessed=bytes_accessed),
    )(q, w_fold, bias2d)

    # Strip lane padding (no-op when Lp == Lo) and unflatten to NCHW.
    return out[:, :, :Lo].reshape(N, O, Ho, Wo)


# ------------------------------- Demo / check --------------------------------
if __name__ == "__main__":
    # Module config (RDFTConv defaults): kernel_size=(3,3), freq=(3,2),
    # stride=2, padding=1, corr=True.
    in_channels, out_channels = 4, 8
    kernel_size = (3, 3)
    freq_size = (3, 2)

    key = jax.random.PRNGKey(0)
    k1, k2, k3, k4 = jax.random.split(key, 4)

    kernel_real = jax.random.normal(k1, (out_channels, in_channels) + freq_size,
                                    dtype=jnp.float32)
    kernel_imag = jax.random.normal(k2, (out_channels, in_channels) + freq_size,
                                    dtype=jnp.float32)
    bias = jax.random.normal(k3, (out_channels,), dtype=jnp.float32)
    x = jax.random.normal(k4, (2, in_channels, 16, 16), dtype=jnp.float32)

    y = rdft_conv_forward(x, kernel_real, kernel_imag, bias,
                          kernel_size=kernel_size, stride=2, padding=1, corr=True)
    y = jax.block_until_ready(y)
    assert y.shape == (2, out_channels, 8, 8), y.shape

    kernel_ref = jnp.fft.irfft2(kernel_real + 1j * kernel_imag,
                                s=kernel_size, axes=(-2, -1)).astype(jnp.float32)

    # Strict check: reference conv in f32 on the *same* bf16-rounded operands
    # (the kernel multiplies bf16 operands exactly and accumulates in f32).
    x_q = x.astype(jnp.bfloat16).astype(jnp.float32)
    k_q = kernel_ref.astype(jnp.bfloat16).astype(jnp.float32)
    y_strict = jax.lax.conv_general_dilated(
        x_q, k_q, window_strides=(2, 2), padding=((1, 1), (1, 1)),
        dimension_numbers=("NCHW", "OIHW", "NCHW"),
        precision=jax.lax.Precision.HIGHEST) + bias.reshape(1, -1, 1, 1)
    assert jnp.allclose(y, y_strict, atol=1e-3, rtol=1e-3), \
        float(jnp.max(jnp.abs(y - y_strict)))

    # Loose check vs. the full-f32 reference (only bf16 operand rounding differs).
    y_f32 = jax.lax.conv_general_dilated(
        x, kernel_ref, window_strides=(2, 2), padding=((1, 1), (1, 1)),
        dimension_numbers=("NCHW", "OIHW", "NCHW"),
        precision=jax.lax.Precision.HIGHEST) + bias.reshape(1, -1, 1, 1)
    assert jnp.allclose(y, y_f32, atol=0.15, rtol=0.05), \
        float(jnp.max(jnp.abs(y - y_f32)))

    print("KERNEL_OK")
</pallas_src>

<mosaic_0001>
module attributes {stable_mosaic.version = 11 : i64} {
  func.func @_conv_kernel(%arg0: i32, %arg1: i32, %arg2: memref<1x36x128xbf16, #tpu.memory_space<vmem>>, %arg3: memref<8x36xbf16, #tpu.memory_space<vmem>>, %arg4: memref<8x1xf32, #tpu.memory_space<vmem>>, %arg5: memref<1x8x128xf32, #tpu.memory_space<vmem>>) attributes {dimension_semantics = [#tpu.dimension_semantics<parallel>, #tpu.dimension_semantics<parallel>], iteration_bounds = array<i64: 2, 1>, scalar_prefetch = 0 : i64, scratch_operands = 0 : i64, tpu.core_type = #tpu.core_type<tc>, window_params = [{transform_indices = @transform_0, window_bounds = array<i64: 1, 36, 128>}, {pipeline_mode = #tpu.pipeline_mode<synchronous>, transform_indices = @transform_1, window_bounds = array<i64: 8, 36>}, {pipeline_mode = #tpu.pipeline_mode<synchronous>, transform_indices = @transform_2, window_bounds = array<i64: 8, 1>}, {transform_indices = @transform_3, window_bounds = array<i64: 1, 8, 128>}]} {
    %c0 = arith.constant 0 : index
    %c0_0 = arith.constant 0 : index
    %0 = vector.load %arg3[%c0, %c0_0] : memref<8x36xbf16, #tpu.memory_space<vmem>>, vector<8x36xbf16>
    %c0_1 = arith.constant 0 : index
    %c0_2 = arith.constant 0 : index
    %c0_3 = arith.constant 0 : index
    %1 = vector.load %arg2[%c0_1, %c0_2, %c0_3] : memref<1x36x128xbf16, #tpu.memory_space<vmem>>, vector<1x36x128xbf16>
    %2 = vector.shape_cast %1 : vector<1x36x128xbf16> to vector<36x128xbf16>
    %cst = arith.constant dense<0.000000e+00> : vector<8x128xf32>
    %3 = tpu.matmul %0, %2, %cst {dimension_numbers = #tpu.dot_dimension_numbers<[1], [0], [0], [1], [0, 0, 1, 1], [], []>} : vector<8x36xbf16>, vector<36x128xbf16>, vector<8x128xf32> -> vector<8x128xf32>
    %c0_4 = arith.constant 0 : index
    %c0_5 = arith.constant 0 : index
    %4 = vector.load %arg4[%c0_4, %c0_5] : memref<8x1xf32, #tpu.memory_space<vmem>>, vector<8x1xf32>
    %5 = vector.broadcast %4 : vector<8x1xf32> to vector<8x128xf32>
    %6 = arith.addf %3, %5 : vector<8x128xf32>
    %c0_6 = arith.constant 0 : index
    %c0_7 = arith.constant 0 : index
    %c0_8 = arith.constant 0 : index
    %7 = vector.load %arg5[%c0_6, %c0_7, %c0_8] : memref<1x8x128xf32, #tpu.memory_space<vmem>>, vector<1x8x128xf32>
    %8 = vector.shape_cast %7 : vector<1x8x128xf32> to vector<8x128xf32>
    %9 = vector.shape_cast %6 : vector<8x128xf32> to vector<1x8x128xf32>
    tpu.vector_store %arg5[%c0_6, %c0_7, %c0_8], %9 {strides = array<i32>} : memref<1x8x128xf32, #tpu.memory_space<vmem>>, vector<1x8x128xf32>,
    return
  }
  func.func @transform_0(%arg0: i32, %arg1: i32) -> (i32, i32, i32) {
    %c0_i32 = arith.constant 0 : i32
    %c0_i32_0 = arith.constant 0 : i32
    return %arg0, %c0_i32, %arg1 : i32, i32, i32
  }
  func.func @transform_1(%arg0: i32, %arg1: i32) -> (i32, i32) {
    %c0_i32 = arith.constant 0 : i32
    %c0_i32_0 = arith.constant 0 : i32
    %c0_i32_1 = arith.constant 0 : i32
    return %c0_i32, %c0_i32_0 : i32, i32
  }
  func.func @transform_2(%arg0: i32, %arg1: i32) -> (i32, i32) {
    %c0_i32 = arith.constant 0 : i32
    %c0_i32_0 = arith.constant 0 : i32
    %c0_i32_1 = arith.constant 0 : i32
    return %c0_i32, %c0_i32_0 : i32, i32
  }
  func.func @transform_3(%arg0: i32, %arg1: i32) -> (i32, i32, i32) {
    %c0_i32 = arith.constant 0 : i32
    %c0_i32_0 = arith.constant 0 : i32
    return %arg0, %c0_i32, %arg1 : i32, i32, i32
  }
}

</mosaic_0001>

<bundles_post_ra>
// kernel: rdft_conv_forward.1
= control target key start
LH: loop header
LB: loop body
LE: loop exit
PB: predicated region body
PF: predicated region fallthrough
CT: control target
= control target key end

     0   :  { %s460_s12 = smov 0   ;;  %s462_s13 = smov 0   ;;  %s499_s0 = inlined_call_operand.vmem [shape: bf16[2,36,128], index: 0, kind: input, shape index: {}]   ;;  %s500_s1 = inlined_call_operand.vmem [shape: bf16[8,36], index: 1, kind: input, shape index: {}]   ;;  %s501_s2 = inlined_call_operand.vmem [shape: f32[8,1], index: 2, kind: input, shape index: {}]   ;;  %s502_s3 = inlined_call_operand.vmem [shape: f32[2,8,128], index: 3, kind: output, shape index: {}]  }
   0x1   :  { %s464_s14 = smov 0  }
   0x2 LB: > { %s25_s15 = sadd.s32 1, %s431_s13  ;;  %p358_p0 = scmp.ge.s32.totalorder %s435_s14, 1  ;;  %s435_s14 = sphi %s464_s14, %s13_s14   ;;  %s431_s13 = sphi %s462_s13, %s504_s13   ;;  %s427_s12 = sphi %s460_s12, %s503_s12  }
   0x3   : > { %p27_p1 = scmp.ge.s32.totalorder %s25_s15, 2  ;;  %p156_p2 = scmp.lt.s32.totalorder %s435_s14, 3 }
   0x5   : > { %s506_s15 = smov (%p27_p1, %s25_s15), 0  ;;  %p157_p3 = pnand %p358_p0, %p156_p2 }
   0x6   : > { %p185_p4 = scmp.lt.s32.totalorder (!%p157_p3), %s427_s12, 1 }
   0x7   : > { %160 = sbr.rel (%p157_p3) target bundleno = 228 (0xe4), region = 32 }
   0xc   : > { %v437_v0 = vmov 0.0   ;;  %vm438_vm0 = vmmov 0   ;;  %v207_v1 = vld [vmem:[%s501_s2] sm:$0xff]  ;;  %s508_s12 = smov (!%p185_p4, %s427_s12), 1  ;;  %v439_v2 = vmov 0   ;;  %vm232_vm1 = vcmask 1041408  }
   0xd   : > { %371 = vmatprep.subr.bf16.mxu0 %v437_v0  ;;  %377 = vmatprep.mubr.msk.bf16.mxu0 %vm438_vm0, %v437_v0  ;;  %s381_s18 = smul.u32 20, %s508_s12  ;;  %v201_v7 = vld [vmem:[%s500_s1] sm:$0xf]  ;;  %vm228_vm2 = vcmask 293888   ;;  %s360_s24 = sshll.u32 %s508_s12, 3 }
   0xe   : > { %409 = vset.pattern.permute.xlu0 %v439_v2  ;;  %s199_s27 = scalar_lea.vmem %s502_s3, %s360_s24 }
   0xf   : > { %210 = vperm.xlu0 %409, %v207_v1   ;;  %s192_s21 = scalar_lea.vmem %s499_s0, %s381_s18 }
  0x10   : > { %v410_v3 = vld [vmem:[%s192_s21 + $0x10] ss:$0 sps:$4 sm:$0x33]   ;;  %v411_v5 = vld [vmem:[%s192_s21 + $0x8] sm:$0xff]   ;;  %v412_v6 = vld [vmem:[%s192_s21] sm:$0xff]  }
  0x11   : > { %v234_v4 = vsel %vm232_vm1, %v410_v3, 0 }
  0x12   : > { %372 = vmatpush3.bf16.msra.mxu0 %v234_v4 }
  0x13   : > { %373 = vmatprep.subr.bf16.mxu0 %v437_v0 }
  0x16   : > { %374 = vmatpush3.bf16.msra.mxu0 %v411_v5 }
  0x17   : > { %375 = vmatprep.subr.bf16.mxu0 %v437_v0 }
  0x1a   : > { %376 = vmatpush3.bf16.msra.mxu0 %v412_v6 }
  0x1d   : > { %378 = vmatmul.mubr.msk.bf16.vlgmr.msra.gmra.mxu0 %vm228_vm2, %v201_v7 }
  0x8a   : > { %v211_v8 = vpop.permute.xlu0 %210 }
  0xdd   : > { %v270_v9 = vpop.f32.mrf.mxu0 }
  0xde   : > { %v271_v10 = vadd.f32 %v270_v9, %v211_v8 }
  0xdf   : > { %v379_v11 = vpop.f32.mrf.mxu0 }
  0xe0   : > { %276 = vst [vmem:[%s199_s27] sm:$0xff] %v271_v10 }
  0xe1   : > { %v273_v12 = vpop.f32.mrf.mxu0 }
  0xe3   : > { %v380_v13 = vpop.f32.mrf.mxu0 }
  0xe4 PF: > { %s13_s14 = sadd.s32 1, %s435_s14   ;;  %s503_s12 = smov %s431_s13 }
  0xe5   : > { %p10_p5 = scmp.ge.s32.totalorder %s13_s14, 4   ;;  %s504_s13 = smov %s506_s15 }
  0xe7   :  { %12 = sbr.rel (!%p10_p5) target bundleno = 2 (0x2), region = 62 }

</bundles_post_ra>
